<compile_context>
chip_gen: v6e
topology: v6e:2x2x1
jax: 0.10.0
libtpu: 0.0.40
codegen_flags: <defaults>
</compile_context>

<pallas_src>
import functools

import jax
import jax.numpy as jnp
from jax.experimental import pallas as pl
from jax.experimental.pallas import tpu as pltpu


def _cdiv(a, b):
    return (a + b - 1) // b


def _round_up(a, b):
    return _cdiv(a, b) * b


def _round_down(a, b):
    return (a // b) * b


# --------------------------------------------------------------------------- kernels

def _tcn_kernel_tiled(x_ref, h_ref, w_ref, b_ref, o_ref, *, K, D, P, TL, HALO, L):
    # x_ref: (1, C_in, TL)    current input tile of the UNPADDED signal (f32)
    # h_ref: (1, C_in, HALO)  left halo (the HALO columns just before this tile)
    # w_ref: (K, C_out, C_in) bf16 taps
    # b_ref: (C_out, 1)       f32 bias
    # o_ref: (1, C_out, TL)   lane-dense output tile (f32)
    j = pl.program_id(1)
    base = j * TL
    c_out = o_ref.shape[1]

    # Global (unpadded-x) column index of every lane; out-of-range -> exact zero.
    col_t = jax.lax.broadcasted_iota(jnp.int32, (1, TL), 1) + base
    col_h = jax.lax.broadcasted_iota(jnp.int32, (1, HALO), 1) + (base - HALO)
    tile = jnp.where(col_t < L, x_ref[0].astype(jnp.bfloat16), 0)
    halo = jnp.where((col_h >= 0) & (col_h < L), h_ref[0].astype(jnp.bfloat16), 0)

    # Window over x columns [base - HALO, base + TL); out[t] needs x[t - P + k*D].
    win = jnp.concatenate([halo, tile], axis=1)            # (C_in, HALO + TL), bf16

    acc = jnp.zeros((c_out, TL), jnp.float32)
    for k in range(K):                                      # K accumulated MXU matmuls
        s = HALO - P + k * D
        acc = acc + jnp.dot(w_ref[k], win[:, s:s + TL],
                            preferred_element_type=jnp.float32)
    acc = acc + b_ref[...]                                  # bias broadcast over lanes
    o_ref[0] = jnp.maximum(acc, 0.0).astype(o_ref.dtype)    # ReLU


def _tcn_kernel_small(x_ref, w_ref, b_ref, o_ref, *, K, D, P, L_out):
    # Single-block path for short signals (L < HALO): build the padded window in VMEM.
    x = x_ref[0].astype(jnp.bfloat16)                       # (C_in, L)
    c_in = x.shape[0]
    c_out = o_ref.shape[1]
    if P > 0:
        z = jnp.zeros((c_in, P), jnp.bfloat16)
        win = jnp.concatenate([z, x, z], axis=1)            # (C_in, L + 2P)
    else:
        win = x
    acc = jnp.zeros((c_out, L_out), jnp.float32)
    for k in range(K):
        s = k * D
        acc = acc + jnp.dot(w_ref[k], win[:, s:s + L_out],
                            preferred_element_type=jnp.float32)
    acc = acc + b_ref[...]
    o_ref[0] = jnp.maximum(acc, 0.0).astype(o_ref.dtype)


# --------------------------------------------------------------------------- wrapper

def tcn_forward(x, weight, bias, *, kernel_size, dilation):
    """x: (N, C_in, L) f32.  weight: (C_out, C_in, K).  bias: (C_out,).
    Returns (N, C_out, L + (K-1)*dilation) f32, matching PyTorch TCN.forward."""
    N, C_in, L = x.shape
    C_out = weight.shape[0]
    K = int(kernel_size)
    D = int(dilation)
    P = (K - 1) * D
    L_out = L + P

    # Weights as (K, C_out, C_in) bf16 (k sliced statically in-kernel), bias (C_out, 1).
    w_koc = jnp.transpose(weight, (2, 0, 1)).astype(jnp.bfloat16)
    b2d = bias.astype(jnp.float32).reshape(C_out, 1)

    # Per-generation VMEM budget: ~96 MiB on v5e/v6e (128 MiB phys), ~48 MiB on v7x (64).
    try:
        vmem_cap = int(pltpu.get_tpu_info().vmem_capacity_bytes)
    except Exception:  # pragma: no cover - conservative fallback
        vmem_cap = 64 * 1024 * 1024
    vmem_limit = min(96 * 1024 * 1024, (vmem_cap * 3) // 4)

    flops = 2 * N * L_out * K * C_in * C_out
    HALO = _round_up(max(P, 1), 128)                 # 128-aligned dilated reach

    # ---------------- small-signal path: one block per batch row ----------------
    if L < HALO:
        kernel = functools.partial(_tcn_kernel_small, K=K, D=D, P=P, L_out=L_out)
        bytes_acc = (4 * N * C_in * L + 2 * K * C_out * C_in + 4 * C_out
                     + 4 * N * C_out * L_out)
        return pl.pallas_call(
            kernel,
            out_shape=jax.ShapeDtypeStruct((N, C_out, L_out), jnp.float32),
            grid_spec=pltpu.PrefetchScalarGridSpec(
                num_scalar_prefetch=0,
                grid=(N,),
                in_specs=[
                    pl.BlockSpec((1, C_in, L), lambda n: (n, 0, 0)),
                    pl.BlockSpec((K, C_out, C_in), lambda n: (0, 0, 0)),
                    pl.BlockSpec((C_out, 1), lambda n: (0, 0)),
                ],
                out_specs=pl.BlockSpec((1, C_out, L_out), lambda n: (n, 0, 0)),
            ),
            compiler_params=pltpu.CompilerParams(
                dimension_semantics=("parallel",),
                vmem_limit_bytes=vmem_limit,
            ),
            cost_estimate=pl.CostEstimate(
                flops=flops, transcendentals=0, bytes_accessed=bytes_acc),
        )(x, w_koc, b2d)

    # ---------------- tiled path: grid (N, J) over L tiles + left halo ----------------
    # Tile length (lanes): target 1024-2048, bounded by a VMEM budget and by L so that
    # input blocks never exceed the array dimension (only standard partial last blocks).
    per_lane_bytes = (14 + 2 * K) * C_in + 12 * C_out       # rough per-lane VMEM working set
    TL_target = 2048
    TL_vmem = max(HALO, int(vmem_limit * 0.6) // max(per_lane_bytes, 1))
    TL_cap = _round_down(L, HALO)                            # >= HALO since L >= HALO
    TL = min(TL_target, TL_vmem, TL_cap)
    TL = max(HALO, _round_down(TL, HALO))
    J = _cdiv(L_out, TL)

    # Keep enough grid steps for double-buffering + megacore sharding.
    MIN_STEPS = 8
    if N * J < MIN_STEPS and TL > HALO:
        want_J = _cdiv(MIN_STEPS, N)
        TL = max(HALO, _round_down(max(HALO, L_out // want_J), HALO))
        TL = min(TL, TL_cap)
        J = _cdiv(L_out, TL)

    u = TL // HALO                   # TL is a multiple of HALO
    nT = _cdiv(L, TL)                # number of TL blocks of x along L
    nH = _cdiv(L, HALO)              # number of HALO blocks of x along L

    kernel = functools.partial(_tcn_kernel_tiled, K=K, D=D, P=P, TL=TL, HALO=HALO, L=L)
    bytes_acc = (4 * N * J * C_in * (TL + HALO)              # tile + halo reads
                 + 2 * K * C_out * C_in + 4 * C_out
                 + 4 * N * J * C_out * TL)                   # output writes (incl. tail)

    return pl.pallas_call(
        kernel,
        out_shape=jax.ShapeDtypeStruct((N, C_out, L_out), jnp.float32),
        grid_spec=pltpu.PrefetchScalarGridSpec(
            num_scalar_prefetch=0,
            grid=(N, J),
            in_specs=[
                # current tile of x (clamped at the right edge; masked in-kernel)
                pl.BlockSpec((1, C_in, TL),
                             lambda n, j: (n, 0, jnp.minimum(j, nT - 1))),
                # left halo: the HALO columns just before this tile (clamped; masked)
                pl.BlockSpec((1, C_in, HALO),
                             lambda n, j: (n, 0, jnp.clip(j * u - 1, 0, nH - 1))),
                # weights + bias: constant block index -> fetched once, kept resident
                pl.BlockSpec((K, C_out, C_in), lambda n, j: (0, 0, 0)),
                pl.BlockSpec((C_out, 1), lambda n, j: (0, 0)),
            ],
            out_specs=pl.BlockSpec((1, C_out, TL), lambda n, j: (n, 0, j)),
        ),
        compiler_params=pltpu.CompilerParams(
            dimension_semantics=("parallel", "parallel"),
            vmem_limit_bytes=vmem_limit,
        ),
        cost_estimate=pl.CostEstimate(
            flops=flops, transcendentals=0, bytes_accessed=bytes_acc),
    )(x, x, w_koc, b2d)


# --------------------------------------------------------------------------- reference

def _reference(x_ncl, weight, bias, *, kernel_size, dilation):
    P = (kernel_size - 1) * dilation
    out = jax.lax.conv_general_dilated(
        x_ncl, weight,
        window_strides=(1,),
        padding=[(P, P)],
        rhs_dilation=(dilation,),
        dimension_numbers=("NCH", "OIH", "NCH"),
    )
    out = out + bias[None, :, None]
    return jnp.maximum(out, 0.0)


if __name__ == "__main__":
    master = jax.random.PRNGKey(0)

    def run_case(N, C_in, C_out, L, K, D, key):
        kx, kw, kb = jax.random.split(key, 3)
        x = jax.random.normal(kx, (N, C_in, L), dtype=jnp.float32)
        weight = jax.random.normal(kw, (C_out, C_in, K), dtype=jnp.float32) * 0.1
        bias = jax.random.normal(kb, (C_out,), dtype=jnp.float32) * 0.1

        out = tcn_forward(x, weight, bias, kernel_size=K, dilation=D)
        out = jax.block_until_ready(out)

        ref = _reference(x, weight, bias, kernel_size=K, dilation=D)
        assert out.shape == (N, C_out, L + (K - 1) * D), out.shape
        # bf16 MXU operands with f32 accumulation -> small rounding vs f32 reference.
        assert jnp.allclose(out, ref, atol=2e-2, rtol=2e-2), "mismatch vs reference"

    # Small, module-consistent shapes (exercises the single-block path).
    run_case(2, 4, 8, 16, 3, 2, jax.random.fold_in(master, 0))
    # Larger shape exercising the L-tiled halo/mask path.
    run_case(2, 16, 32, 512, 3, 4, jax.random.fold_in(master, 1))

    print("KERNEL_OK")
</pallas_src>

<mosaic_0001>
module attributes {stable_mosaic.version = 11 : i64} {
  func.func @_tcn_kernel_small(%arg0: i32, %arg1: memref<1x4x16xf32, #tpu.memory_space<vmem>>, %arg2: memref<3x8x4xbf16, #tpu.memory_space<vmem>>, %arg3: memref<8x1xf32, #tpu.memory_space<vmem>>, %arg4: memref<1x8x20xf32, #tpu.memory_space<vmem>>) attributes {dimension_semantics = [#tpu.dimension_semantics<parallel>], iteration_bounds = array<i64: 2>, scalar_prefetch = 0 : i64, scratch_operands = 0 : i64, tpu.core_type = #tpu.core_type<tc>, window_params = [{transform_indices = @transform_0, window_bounds = array<i64: 1, 4, 16>}, {pipeline_mode = #tpu.pipeline_mode<synchronous>, transform_indices = @transform_1, window_bounds = array<i64: 3, 8, 4>}, {pipeline_mode = #tpu.pipeline_mode<synchronous>, transform_indices = @transform_2, window_bounds = array<i64: 8, 1>}, {transform_indices = @transform_3, window_bounds = array<i64: 1, 8, 20>}]} {
    %c0 = arith.constant 0 : index
    %c0_0 = arith.constant 0 : index
    %c0_1 = arith.constant 0 : index
    %0 = vector.load %arg1[%c0, %c0_0, %c0_1] : memref<1x4x16xf32, #tpu.memory_space<vmem>>, vector<1x4x16xf32>
    %1 = vector.shape_cast %0 : vector<1x4x16xf32> to vector<4x16xf32>
    %2 = arith.truncf %1 : vector<4x16xf32> to vector<4x16xbf16>
    %cst = arith.constant 0.000000e+00 : bf16
    %3 = vector.broadcast %cst : bf16 to vector<4x4xbf16>
    %4 = tpu.concatenate %3, %2, %3 in 1 : vector<4x4xbf16>, vector<4x16xbf16>, vector<4x4xbf16> -> vector<4x24xbf16>
    %cst_2 = arith.constant 0.000000e+00 : f32
    %5 = vector.broadcast %cst_2 : f32 to vector<8x20xf32>
    %c0_3 = arith.constant 0 : index
    %c0_4 = arith.constant 0 : index
    %c0_5 = arith.constant 0 : index
    %6 = vector.load %arg2[%c0_3, %c0_4, %c0_5] : memref<3x8x4xbf16, #tpu.memory_space<vmem>>, vector<1x8x4xbf16>
    %7 = vector.shape_cast %6 : vector<1x8x4xbf16> to vector<8x4xbf16>
    %8 = vector.extract_strided_slice %4 {offsets = [0, 0], sizes = [4, 20], strides = [1, 1]} : vector<4x24xbf16> to vector<4x20xbf16>
    %cst_6 = arith.constant dense<0.000000e+00> : vector<8x20xf32>
    %9 = tpu.matmul %7, %8, %cst_6 {dimension_numbers = #tpu.dot_dimension_numbers<[1], [0], [0], [1], [0, 0, 1, 1], [], []>} : vector<8x4xbf16>, vector<4x20xbf16>, vector<8x20xf32> -> vector<8x20xf32>
    %10 = arith.addf %5, %9 : vector<8x20xf32>
    %c1 = arith.constant 1 : index
    %c0_7 = arith.constant 0 : index
    %c0_8 = arith.constant 0 : index
    %11 = vector.load %arg2[%c1, %c0_7, %c0_8] : memref<3x8x4xbf16, #tpu.memory_space<vmem>>, vector<1x8x4xbf16>
    %12 = vector.shape_cast %11 : vector<1x8x4xbf16> to vector<8x4xbf16>
    %13 = vector.extract_strided_slice %4 {offsets = [0, 2], sizes = [4, 20], strides = [1, 1]} : vector<4x24xbf16> to vector<4x20xbf16>
    %cst_9 = arith.constant dense<0.000000e+00> : vector<8x20xf32>
    %14 = tpu.matmul %12, %13, %cst_9 {dimension_numbers = #tpu.dot_dimension_numbers<[1], [0], [0], [1], [0, 0, 1, 1], [], []>} : vector<8x4xbf16>, vector<4x20xbf16>, vector<8x20xf32> -> vector<8x20xf32>
    %15 = arith.addf %10, %14 : vector<8x20xf32>
    %c2 = arith.constant 2 : index
    %c0_10 = arith.constant 0 : index
    %c0_11 = arith.constant 0 : index
    %16 = vector.load %arg2[%c2, %c0_10, %c0_11] : memref<3x8x4xbf16, #tpu.memory_space<vmem>>, vector<1x8x4xbf16>
    %17 = vector.shape_cast %16 : vector<1x8x4xbf16> to vector<8x4xbf16>
    %18 = vector.extract_strided_slice %4 {offsets = [0, 4], sizes = [4, 20], strides = [1, 1]} : vector<4x24xbf16> to vector<4x20xbf16>
    %cst_12 = arith.constant dense<0.000000e+00> : vector<8x20xf32>
    %19 = tpu.matmul %17, %18, %cst_12 {dimension_numbers = #tpu.dot_dimension_numbers<[1], [0], [0], [1], [0, 0, 1, 1], [], []>} : vector<8x4xbf16>, vector<4x20xbf16>, vector<8x20xf32> -> vector<8x20xf32>
    %20 = arith.addf %15, %19 : vector<8x20xf32>
    %c0_13 = arith.constant 0 : index
    %c0_14 = arith.constant 0 : index
    %21 = vector.load %arg3[%c0_13, %c0_14] : memref<8x1xf32, #tpu.memory_space<vmem>>, vector<8x1xf32>
    %22 = vector.broadcast %21 : vector<8x1xf32> to vector<8x20xf32>
    %23 = arith.addf %20, %22 : vector<8x20xf32>
    %cst_15 = arith.constant 0.000000e+00 : f32
    %24 = vector.broadcast %cst_15 : f32 to vector<8x20xf32>
    %25 = arith.maximumf %23, %24 : vector<8x20xf32>
    %c0_16 = arith.constant 0 : index
    %c0_17 = arith.constant 0 : index
    %c0_18 = arith.constant 0 : index
    %26 = vector.load %arg4[%c0_16, %c0_17, %c0_18] : memref<1x8x20xf32, #tpu.memory_space<vmem>>, vector<1x8x20xf32>
    %27 = vector.shape_cast %26 : vector<1x8x20xf32> to vector<8x20xf32>
    %28 = vector.shape_cast %25 : vector<8x20xf32> to vector<1x8x20xf32>
    tpu.vector_store %arg4[%c0_16, %c0_17, %c0_18], %28 {strides = array<i32>} : memref<1x8x20xf32, #tpu.memory_space<vmem>>, vector<1x8x20xf32>,
    return
  }
  func.func @transform_0(%arg0: i32) -> (i32, i32, i32) {
    %c0_i32 = arith.constant 0 : i32
    %c0_i32_0 = arith.constant 0 : i32
    %c0_i32_1 = arith.constant 0 : i32
    return %arg0, %c0_i32, %c0_i32_0 : i32, i32, i32
  }
  func.func @transform_1(%arg0: i32) -> (i32, i32, i32) {
    %c0_i32 = arith.constant 0 : i32
    %c0_i32_0 = arith.constant 0 : i32
    %c0_i32_1 = arith.constant 0 : i32
    %c0_i32_2 = arith.constant 0 : i32
    return %c0_i32, %c0_i32_0, %c0_i32_1 : i32, i32, i32
  }
  func.func @transform_2(%arg0: i32) -> (i32, i32) {
    %c0_i32 = arith.constant 0 : i32
    %c0_i32_0 = arith.constant 0 : i32
    %c0_i32_1 = arith.constant 0 : i32
    return %c0_i32, %c0_i32_0 : i32, i32
  }
  func.func @transform_3(%arg0: i32) -> (i32, i32, i32) {
    %c0_i32 = arith.constant 0 : i32
    %c0_i32_0 = arith.constant 0 : i32
    %c0_i32_1 = arith.constant 0 : i32
    return %arg0, %c0_i32, %c0_i32_0 : i32, i32, i32
  }
}

</mosaic_0001>

<bundles_post_ra>
// kernel: tpu_custom_call.1
= control target key start
LH: loop header
LB: loop body
LE: loop exit
PB: predicated region body
PF: predicated region fallthrough
CT: control target
= control target key end

     0   :  { %8 = vsyncpa [#allocation3], 0  ;;  %s701_s0 = inlined_call_operand.vmem [shape: f32[2,4,16], index: 0, kind: input, shape index: {}]   ;;  %s702_s1 = inlined_call_operand.vmem [shape: bf16[3,8,4], index: 1, kind: input, shape index: {}]   ;;  %s703_s2 = inlined_call_operand.vmem [shape: f32[8,1], index: 2, kind: input, shape index: {}]   ;;  %s704_s3 = inlined_call_operand.hbm [shape: f32[2,8,20], index: 3, kind: output, shape index: {}]  }
   0x1   :  { %10 = vsyncpa [#allocation3 + $0x1], 0  ;;  %s584_s12 = smov 0   ;;  %s586_s13 = smov 0  }
   0x2   :  { %s588_s14 = smov 0   ;;  %s590_s15 = smov 0  }
   0x3 LB: > { %s605_s16 = sadd.s32 4294967295, %s555_s15   ;;  %s409_s17 = sadd.s32 4294967294, %s555_s15   ;;  %s555_s15 = sphi %s590_s15, %s710_s15   ;;  %s551_s14 = sphi %s588_s14, %s709_s14   ;;  %s547_s13 = sphi %s586_s13, %s708_s13   ;;  %s543_s12 = sphi %s584_s12, %s707_s12  }
   0x4   : > { %s609_s18 = sadd.s32 1, %s555_s15   ;;  %s91_s19 = sadd.s32 1, %s551_s14 }
   0x5   : > { %s88_s20 = ssub.s32 %s555_s15, %s609_s18  ;;  %p101_p0 = scmp.ne.s32.totalorder %s551_s14, %s547_s13 }
   0x6   : > { %p89_p1 = scmp.eq.s32.totalorder %s88_s20, 0  ;;  %p102_p2 = scmp.eq.s32.totalorder %s605_s16, 1 }
   0x7   : > { %p107_p3 = scmp.ne.s32.totalorder %s547_s13, %s543_s12  ;;  %p108_p4 = scmp.eq.s32.totalorder %s409_s17, 1 }
   0x8   : > { %s620_s21 = scalar_select %p89_p1, %s551_s14, %s91_s19  }
   0x9   : > { %p622_p5 = por %p102_p2, %p101_p0  ;;  %p626_p6 = por %p108_p4, %p107_p3 }
   0xa   : > { %p412_p7 = scmp.ge.s32.totalorder %s555_s15, 1  ;;  %p139_p8 = scmp.lt.s32.totalorder %s555_s15, 3 }
   0xc   : > { %p140_p9 = pnand %p412_p7, %p139_p8 }
   0xd   : > { %p162_p10 = scmp.lt.s32.totalorder (!%p140_p9), %s605_s16, 1  ;;  %s558_s29 = smov (!%p140_p9), 4  }
   0xe   : > { %143 = sbr.rel (%p140_p9) target bundleno = 482 (0x1e2), region = 32  ;;  %s560_s30 = smov (!%p140_p9), 124  }
   0xf   : > { %s561_s4 = smov (!%p140_p9), 126   ;;  %s159_s19 = sand.u32 (!%p140_p9), 1, %s547_s13  }
  0x10   : > { %s413_s20 = sshll.u32 (!%p140_p9), %s159_s19, 3 }
  0x13   : > { %v557_v0 = vmov 0.0   ;;  %s163_s24 = scalar_select %p162_p10, %s605_s16, 1  ;;  %vm559_vm0 = vmmov 0   ;;  %vm172_vm1 = vcmask 31744   ;;  %vm176_vm2 = vcmask 162816   ;;  %v327_v9 = vld [vmem:[%s703_s2] sm:$0xff] }
  0x14   : > { %436 = vmatprep.subr.bf16.mxu1 %v557_v0  ;;  %430 = vmatprep.subr.bf16.mxu0 %v557_v0  ;;  %vm187_vm3 = vcmask 1041408   ;;  %v178_v7 = vld [vmem:[%s702_s1] sm:$0xf]  ;;  %v562_v8 = vmov 0   ;;  %v415_v13 = vld [vmem:[%s702_s1 + $0x4] sm:$0xf] }
  0x15   : > { %s414_s25 = sshll.u32 %s163_s24, 2  ;;  %432 = vmatprep.mubr.msk.bf16.mxu0 %vm559_vm0, %v557_v0  ;;  %438 = vmatprep.mubr.msk.bf16.mxu1 %vm559_vm0, %v557_v0  ;;  %v418_v15 = vld [vmem:[%s702_s1 + $0x8] sm:$0xf]  ;;  %s421_s24 = sshll.u32 %s605_s16, 7 }
  0x16   : > { %s165_s28 = scalar_lea.vmem %s701_s0, %s414_s25  ;;  %493 = vset.pattern.permute.xlu1 %v562_v8  ;;  %494 = vset.pattern.permute.xlu0 %v562_v8  ;;  %s161_s25 = scalar_lea.vmem [#allocation2], %s413_s20 }
  0x17   : > { %v167_v1 = vld [vmem:[%s165_s28] sm:$0xf]  ;;  %s350_s26 = sshll.u32 %s161_s25, 4  ;;  %s563_s16 = smov [#allocation2]   ;;  %s351_s26 = int_to_ptr.vmem [resolvable:$true] %s350_s26 }
  0x18   : > { %v168_v2 = vpack.c.bf16 %v167_v1, %v167_v1  ;;  %s499_s5 = sshll.u32 %s563_s16, 4  ;;  %s500_s5 = int_to_ptr.vmem [resolvable:$false] %s499_s5 }
  0x19   : > { %s501_s6 = scalar_lea.vmem %s500_s5, 256  ;;  %p502_p0 = scmp.lt.s32.totalorder %s351_s26, %s500_s5 }
  0x1a   : > { %170 = vrot.lane.b32.xlu0 %v168_v2, %s558_s29  ;;  %s665_s29 = scalar_lea.hbm %s704_s3, %s421_s24 }
  0x8c   : > { %v171_v3 = vpop.permute.xlu0 %170 }
  0x8d   : > { %v175_v4 = vsel %vm172_vm1, 0, %v171_v3 }
  0x8e   : > { %v177_v5 = vsel %vm176_vm2, %v175_v4, 0 }
  0x8f   : > { %278 = vrot.lane.b32.xlu1 %v177_v5, %s560_s30  ;;  %182 = vrot.lane.b32.xlu0 %v177_v5, %s561_s4  ;;  %v234_v6 = vsel %vm187_vm3, %v177_v5, 0  ;;  %s337_s30 = scalar_lea.sflag [#allocation3], %s159_s19  ;;  %s495_s4 = scalar_lea.vmem %s351_s26, 128 }
  0x90   : > { %437 = vmatpush3.bf16.msra.mxu1 %v234_v6  ;;  %p496_p11 = scmp.ne.s32.totalorder %s351_s26, %s495_s4  ;;  %p503_p1 = scmp.lt.s32.totalorder %s501_s6, %s495_s4 }
  0x92   : > { %p497_p12 = pnand %p496_p11, %p622_p5  ;;  %p504_p2 = por %p503_p1, %p502_p0 }
  0x93   : > { %439 = vmatmul.mubr.msk.bf16.vlgmr.msra.gmra.mxu1 %vm172_vm1, %v178_v7  ;;  %330 = vperm.xlu1 %493, %v327_v9  }
  0x94   : > { %p498_p13 = pneg %p497_p12 }
  0x96   : > { %p505_p3 = pnand %p504_p2, %p498_p13 }
 0x101   : > { %v183_v10 = vpop.permute.xlu0 %182  ;;  %v279_v12 = vpop.permute.xlu1 %278 }
 0x102   : > { %v189_v11 = vsel %vm187_vm3, %v183_v10, 0  ;;  %v284_v14 = vsel %vm187_vm3, %v279_v12, 0 }
 0x103   : > { %431 = vmatpush3.bf16.msra.mxu0 %v189_v11 }
 0x104   : > { %442 = vmatprep.subr.bf16.mxu0 %v557_v0 }
 0x106   : > { %433 = vmatmul.mubr.msk.bf16.vlgmr.msra.gmra.mxu0 %vm172_vm1, %v415_v13 }
 0x107   : > { %443 = vmatpush3.bf16.msra.mxu0 %v284_v14  ;;  %444 = vmatprep.mubr.msk.bf16.mxu0 %vm559_vm0, %v557_v0 }
 0x10e   : > { %445 = vmatmul.mubr.msk.bf16.vlgmr.msra.gmra.mxu0 %vm172_vm1, %v418_v15  ;;  %v331_v26 = vpop.permute.xlu1 %330 }
 0x153   : > { %v270_v16 = vpop.f32.mrf.mxu1 }
 0x155   : > { %v440_v17 = vpop.f32.mrf.mxu1 }
 0x157   : > { %v273_v18 = vpop.f32.mrf.mxu1 }
 0x159   : > { %v441_v19 = vpop.f32.mrf.mxu1 }
 0x1c6   : > { %v225_v20 = vpop.f32.mrf.mxu0 }
 0x1c7   : > { %v271_v24 = vadd.f32 %v270_v16, %v225_v20 }
 0x1c8   : > { %v434_v21 = vpop.f32.mrf.mxu0 }
 0x1ca   : > { %v228_v22 = vpop.f32.mrf.mxu0 }
 0x1cc   : > { %v435_v23 = vpop.f32.mrf.mxu0 }
 0x1ce   : > { %v320_v25 = vpop.f32.mrf.mxu0 }
 0x1cf   : > { %v326_v27 = vadd.f32 %v320_v25, %v271_v24 }
 0x1d0   : > { %v446_v28 = vpop.f32.mrf.mxu0 }
 0x1d1   : > { %v333_v29 = vadd.f32 %v331_v26, %v326_v27 }
 0x1d2   : > { %v323_v30 = vpop.f32.mrf.mxu0 }
 0x1d3   : > { %v334_v31 = vmax.f32 %v333_v29, 0.0 }
 0x1d4   : > { %v447_v32 = vpop.f32.mrf.mxu0 }
 0x1d5   : > { %335 = vst.msk [vmem:[%s161_s25] sm:$0xff] %vm176_vm2, %v334_v31 }
 0x1d6   : > { %508 = shalt.err (!%p505_p3)
}
 0x1d7   : > { %s509_s7 = scalar_lea.hbm %s665_s29, 128  ;;  %s513_s10 = scalar_lea.hbm %s704_s3, 256 }
 0x1d8   : > { %p510_p4 = scmp.ne.s32.totalorder %s665_s29, %s509_s7  ;;  %p514_p9 = scmp.lt.s32.totalorder %s665_s29, %s704_s3 }
 0x1d9   : > { %p515_p10 = scmp.lt.s32.totalorder %s513_s10, %s509_s7 }
 0x1da   : > { %p511_p7 = pnand %p510_p4, %p622_p5 }
 0x1db   : > { %p516_p11 = por %p515_p10, %p514_p9 }
 0x1dc   : > { %p512_p8 = pneg %p511_p7 }
 0x1de   : > { %p517_p12 = pnand %p516_p11, %p512_p8 }
 0x1e0   : > { %520 = shalt.err (!%p517_p12)
}
 0x1e1   : > { %448 = dma.vmem_to_hbm [thread:$0]  (%p622_p5), %s351_s26, 128, %s665_s29, %s337_s30  }
 0x1e2 PF: > { %p454_p13 = scmp.ge.s32.totalorder %s555_s15, 2  ;;  %s362_s19 = sand.u32 1, %s543_s12  }
 0x1e3   : > { %s363_s20 = scalar_lea.sflag [#allocation3], %s362_s19 }
 0x1e4   : > { %p451_p0 = pnand %p454_p13, %p626_p6 }
 0x1e6   : > { %p452_p1 = pneg %p451_p0 }
 0x1e8   : > { %538 = dma.done.wait (%p452_p1), %s363_s20, 128  }
 0x1e9   : > { %540 = vsyncadd (%p452_p1), %s363_s20, 4294967168  ;;  %p13_p2 = scmp.ge.s32.totalorder %s609_s18, 4   ;;  %s707_s12 = smov %s547_s13 }
 0x1ea   : > { %s708_s13 = smov %s551_s14  ;;  %s709_s14 = smov %s620_s21 }
 0x1eb   : > { %s710_s15 = smov %s609_s18  ;;  %15 = sbr.rel (!%p13_p2) target bundleno = 3 (0x3), region = 69 }
 0x1f0   :  { %368 = vsyncpa [#allocation3], 1 }
 0x1f1   :  { %370 = vsyncpa [#allocation3 + $0x1], 1 }

</bundles_post_ra>
